<compile_context>
chip_gen: v5e
topology: v5e:2x2
jax: 0.10.0
libtpu: 0.0.40
codegen_flags: <defaults>
</compile_context>

<pallas_src>
import jax
import jax.numpy as jnp
from jax import lax
from jax.experimental import pallas as pl
from jax.experimental.pallas import tpu as pltpu


def _round_up(x, m):
    return ((x + m - 1) // m) * m


def _fwd_dynamics_kernel(x_ref, a_ref, w1s_ref, w1a_ref, b1_ref, w2_ref, b2_ref,
                         o_ref):
    # x_ref  : (tm, H)  bf16 (or f32) state-embedding row tile
    # a_ref  : (tm, 1)  int32 action ids
    # w1s_ref: (H, H)   bf16  state half of W1 (in, out layout)
    # w1a_ref: (A, H)   bf16  action half of W1 (in, out layout)
    # b1_ref : (1, H)   f32
    # w2_ref : (H, H)   bf16  second Linear weight (in, out layout)
    # b2_ref : (1, H)   f32
    # o_ref  : (tm, H)  f32 (or bf16)
    tm = x_ref.shape[0]
    A = w1a_ref.shape[0]

    x = x_ref[...].astype(jnp.bfloat16)
    # Build the one-hot in-kernel (VPU compare) instead of DMA-ing an (M, A)
    # HBM array; garbage ids in a partial last block only affect rows that the
    # output store masks off anyway.
    onehot = (lax.broadcasted_iota(jnp.int32, (tm, A), 1)
              == a_ref[...]).astype(jnp.bfloat16)

    h = jnp.dot(x, w1s_ref[...], preferred_element_type=jnp.float32)
    h = h + jnp.dot(onehot, w1a_ref[...], preferred_element_type=jnp.float32)
    h = jnp.maximum(h + b1_ref[...], 0.0)                        # bias + ReLU
    # TODO(synk): if a v5e bundle dump shows vst-slot saturation from the
    # full-width f32 `h`, switch to K-slab fusion (accumulate `out` over
    # 256-column slabs of h) so h never materializes at full width.
    out = jnp.dot(h.astype(jnp.bfloat16), w2_ref[...],
                  preferred_element_type=jnp.float32)
    o_ref[...] = (out + b2_ref[...]).astype(o_ref.dtype)


def _choose_tm(M, tm_max):
    """Row tile: large for MXU/DMA efficiency, multiple of 16 (bf16 sublane
    packing), capped so the parallel grid has >= 2 steps when M permits
    (v7x megacore sharding)."""
    if M < 16:
        return M                      # block == full array extent (always legal)
    tm = min(tm_max, _round_up(pl.cdiv(M, 2), 16))
    return max(16, min(tm, _round_up(M, 16)))


def _vmem_limit_bytes(tm, H, A, in_bytes, out_bytes, weight_buffers):
    """Estimate actual VMEM need (weights + double-buffered row tiles + f32 h)
    and add headroom, instead of a blanket 48 MiB (v7x physical VMEM is 64 MiB)."""
    weights = weight_buffers * (2 * H * H * 2 + A * H * 2 + 2 * H * 4)  # bf16 W1s/W2, bf16 W1a, f32 b1/b2
    acts = 2 * (tm * H * in_bytes + tm * 4 + tm * H * out_bytes)        # double-buffered tiles
    scratch = 2 * tm * H * 4                                            # f32 `h` + compiler temps
    need = weights + acts + scratch
    # TODO(synk): for hidden_dim >= 2048 the resident weights alone exceed v7x
    # VMEM; the kernel must then switch to a K/N-tiled grid with an f32
    # accumulator and an "arbitrary" reduction axis.
    return max(min(int(need * 3 // 2) + (4 << 20), 64 << 20), 16 << 20)


def _build_call(M, H, A, tm, in_dtype, out_dtype, single_buffer_weights):
    grid = (pl.cdiv(M, tm),)
    w_kw = {"pipeline_mode": pl.Buffered(1)} if single_buffer_weights else {}
    in_specs = [
        pl.BlockSpec((tm, H), lambda i: (i, 0)),          # state rows
        pl.BlockSpec((tm, 1), lambda i: (i, 0)),          # action ids
        pl.BlockSpec((H, H), lambda i: (0, 0), **w_kw),   # W1 state half
        pl.BlockSpec((A, H), lambda i: (0, 0), **w_kw),   # W1 action half
        pl.BlockSpec((1, H), lambda i: (0, 0), **w_kw),   # b1
        pl.BlockSpec((H, H), lambda i: (0, 0), **w_kw),   # W2
        pl.BlockSpec((1, H), lambda i: (0, 0), **w_kw),   # b2
    ]
    vmem = _vmem_limit_bytes(tm, H, A, jnp.dtype(in_dtype).itemsize,
                             jnp.dtype(out_dtype).itemsize,
                             1 if single_buffer_weights else 2)
    return pl.pallas_call(
        _fwd_dynamics_kernel,
        out_shape=jax.ShapeDtypeStruct((M, H), out_dtype),
        grid_spec=pltpu.PrefetchScalarGridSpec(
            num_scalar_prefetch=0,
            grid=grid,
            in_specs=in_specs,
            out_specs=pl.BlockSpec((tm, H), lambda i: (i, 0)),
        ),
        compiler_params=pltpu.CompilerParams(
            dimension_semantics=("parallel",),
            vmem_limit_bytes=vmem,
        ),
    )


def forward_dynamics_pallas(state_2d, action_2d, w1s, w1a, b1, w2, b2, *,
                            tm=512, out_dtype=jnp.float32):
    """state_2d: (M, H) bf16/f32, action_2d: (M, 1) int32 -> (M, H) out_dtype."""
    M, H = state_2d.shape
    A = w1a.shape[0]
    tm_eff = _choose_tm(M, tm)
    args = (state_2d, action_2d, w1s, w1a, b1, w2, b2)
    try:
        # Single-buffer the constant-index weight/bias blocks.
        return _build_call(M, H, A, tm_eff, state_2d.dtype, out_dtype, True)(*args)
    except Exception:
        # Portable fallback if pipeline_mode=pl.Buffered(1) is not supported
        # by this Pallas build; identical semantics, just double-buffered weights.
        return _build_call(M, H, A, tm_eff, state_2d.dtype, out_dtype, False)(*args)


class MinigridForwardDynamicsNetPallas:
    """JAX/Pallas port of MinigridForwardDynamicsNet."""

    def __init__(self, num_actions, hidden_dim=1024, key=None):
        self.num_actions = num_actions
        self.hidden_dim = hidden_dim
        if key is None:
            key = jax.random.PRNGKey(0)
        k1, k2 = jax.random.split(key)

        relu_gain = jnp.sqrt(2.0)  # nn.init.calculate_gain('relu')
        ortho = jax.nn.initializers.orthogonal

        # PyTorch Linear stores weight as (out, in); init orthogonally there,
        # then transpose to (in, out) for the kernel's x @ W layout.  Split W1
        # into its state-embedding half and action half so the kernel never
        # touches the unaligned (H + A) concatenated input.
        w1 = ortho(scale=relu_gain)(k1, (hidden_dim, hidden_dim + num_actions),
                                    jnp.float32)
        w2 = ortho(scale=1.0)(k2, (hidden_dim, hidden_dim), jnp.float32)

        w1_t = jnp.transpose(w1)                                  # (H+A, H)
        self.w1s = w1_t[:hidden_dim].astype(jnp.bfloat16)         # (H, H)
        self.w1a = w1_t[hidden_dim:].astype(jnp.bfloat16)         # (A, H)
        self.b1 = jnp.zeros((1, hidden_dim), jnp.float32)         # constant_(0)
        self.w2 = jnp.transpose(w2).astype(jnp.bfloat16)          # (H, H)
        self.b2 = jnp.zeros((1, hidden_dim), jnp.float32)

    def __call__(self, state_embedding, action):
        # state_embedding: (T, B, H) bf16 (preferred) or f32 ; action: (T, B) int
        T, B, H = state_embedding.shape
        assert H == self.hidden_dim
        # No wrapper-side dtype cast: the producer should emit bf16 activations
        # (halves the dominant input DMA); f32 callers are cast inside the kernel.
        state_2d = state_embedding.reshape(T * B, H)
        action_2d = action.reshape(T * B, 1).astype(jnp.int32)
        out_2d = forward_dynamics_pallas(state_2d, action_2d, self.w1s, self.w1a,
                                         self.b1, self.w2, self.b2)
        return out_2d.reshape(T, B, H)


def _reference(state_embedding, action, net):
    """Pure-JAX reference with the same bf16 weight/activation treatment."""
    x = state_embedding.astype(jnp.bfloat16)
    a = jax.nn.one_hot(action, net.num_actions, dtype=jnp.bfloat16)
    h = jnp.einsum("tbk,kh->tbh", x, net.w1s,
                   preferred_element_type=jnp.float32)
    h = h + jnp.einsum("tba,ah->tbh", a, net.w1a,
                       preferred_element_type=jnp.float32)
    h = jnp.maximum(h + net.b1[0], 0.0)
    return jnp.einsum("tbh,ho->tbo", h.astype(jnp.bfloat16), net.w2,
                      preferred_element_type=jnp.float32) + net.b2[0]


if __name__ == "__main__":
    # Small shapes consistent with the module's forward:
    #   state_embedding: (T, B, hidden_dim), action: (T, B) ints < num_actions
    T, B = 4, 8
    hidden_dim = 128
    num_actions = 8

    key = jax.random.PRNGKey(0)
    k_param, k_state, k_act = jax.random.split(key, 3)

    net = MinigridForwardDynamicsNetPallas(
        num_actions=num_actions, hidden_dim=hidden_dim, key=k_param)

    # Producer emits bf16 activations (recommended path).
    state_embedding = jax.random.normal(k_state, (T, B, hidden_dim),
                                        jnp.bfloat16)
    action = jax.random.randint(k_act, (T, B), 0, num_actions, jnp.int32)

    out = net(state_embedding, action)
    out = jax.block_until_ready(out)

    ref = _reference(state_embedding, action, net)
    assert out.shape == (T, B, hidden_dim)
    assert out.dtype == jnp.float32
    # bf16 operands with f32 accumulation: loosened tolerance vs. a pure-f32 net.
    assert jnp.allclose(out, ref, atol=1e-2, rtol=1e-2), "mismatch vs reference"

    print("KERNEL_OK")
</pallas_src>

<mosaic_0001>
module attributes {stable_mosaic.version = 11 : i64} {
  func.func @_fwd_dynamics_kernel(%arg0: i32, %arg1: memref<16x128xbf16, #tpu.memory_space<vmem>>, %arg2: memref<16x1xi32, #tpu.memory_space<vmem>>, %arg3: memref<128x128xbf16, #tpu.memory_space<vmem>>, %arg4: memref<8x128xbf16, #tpu.memory_space<vmem>>, %arg5: memref<1x128xf32, #tpu.memory_space<vmem>>, %arg6: memref<128x128xbf16, #tpu.memory_space<vmem>>, %arg7: memref<1x128xf32, #tpu.memory_space<vmem>>, %arg8: memref<16x128xf32, #tpu.memory_space<vmem>>) attributes {dimension_semantics = [#tpu.dimension_semantics<parallel>], iteration_bounds = array<i64: 2>, scalar_prefetch = 0 : i64, scratch_operands = 0 : i64, tpu.core_type = #tpu.core_type<tc>, window_params = [{transform_indices = @transform_0, window_bounds = array<i64: 16, 128>}, {transform_indices = @transform_1, window_bounds = array<i64: 16, 1>}, {pipeline_mode = #tpu.pipeline_mode<synchronous>, transform_indices = @transform_2, window_bounds = array<i64: 128, 128>}, {pipeline_mode = #tpu.pipeline_mode<synchronous>, transform_indices = @transform_3, window_bounds = array<i64: 8, 128>}, {pipeline_mode = #tpu.pipeline_mode<synchronous>, transform_indices = @transform_4, window_bounds = array<i64: 1, 128>}, {pipeline_mode = #tpu.pipeline_mode<synchronous>, transform_indices = @transform_5, window_bounds = array<i64: 128, 128>}, {pipeline_mode = #tpu.pipeline_mode<synchronous>, transform_indices = @transform_6, window_bounds = array<i64: 1, 128>}, {transform_indices = @transform_7, window_bounds = array<i64: 16, 128>}]} {
    %c0 = arith.constant 0 : index
    %c0_0 = arith.constant 0 : index
    %0 = vector.load %arg1[%c0, %c0_0] : memref<16x128xbf16, #tpu.memory_space<vmem>>, vector<16x128xbf16>
    %1 = tpu.iota {dimensions = array<i32: 1>} : vector<16x8xi32>
    %c0_1 = arith.constant 0 : index
    %c0_2 = arith.constant 0 : index
    %2 = vector.load %arg2[%c0_1, %c0_2] : memref<16x1xi32, #tpu.memory_space<vmem>>, vector<16x1xi32>
    %3 = vector.broadcast %2 : vector<16x1xi32> to vector<16x8xi32>
    %4 = arith.cmpi eq, %1, %3 : vector<16x8xi32>
    %5 = arith.extui %4 : vector<16x8xi1> to vector<16x8xi32>
    %6 = arith.sitofp %5 : vector<16x8xi32> to vector<16x8xf32>
    %7 = arith.truncf %6 : vector<16x8xf32> to vector<16x8xbf16>
    %c0_3 = arith.constant 0 : index
    %c0_4 = arith.constant 0 : index
    %8 = vector.load %arg3[%c0_3, %c0_4] : memref<128x128xbf16, #tpu.memory_space<vmem>>, vector<128x128xbf16>
    %cst = arith.constant dense<0.000000e+00> : vector<16x128xf32>
    %9 = tpu.matmul %0, %8, %cst {dimension_numbers = #tpu.dot_dimension_numbers<[1], [0], [0], [1], [0, 0, 1, 1], [], []>} : vector<16x128xbf16>, vector<128x128xbf16>, vector<16x128xf32> -> vector<16x128xf32>
    %c0_5 = arith.constant 0 : index
    %c0_6 = arith.constant 0 : index
    %10 = vector.load %arg4[%c0_5, %c0_6] : memref<8x128xbf16, #tpu.memory_space<vmem>>, vector<8x128xbf16>
    %cst_7 = arith.constant dense<0.000000e+00> : vector<16x128xf32>
    %11 = tpu.matmul %7, %10, %cst_7 {dimension_numbers = #tpu.dot_dimension_numbers<[1], [0], [0], [1], [0, 0, 1, 1], [], []>} : vector<16x8xbf16>, vector<8x128xbf16>, vector<16x128xf32> -> vector<16x128xf32>
    %12 = arith.addf %9, %11 : vector<16x128xf32>
    %c0_8 = arith.constant 0 : index
    %c0_9 = arith.constant 0 : index
    %13 = vector.load %arg5[%c0_8, %c0_9] : memref<1x128xf32, #tpu.memory_space<vmem>>, vector<1x128xf32>
    %14 = vector.broadcast %13 : vector<1x128xf32> to vector<16x128xf32>
    %15 = arith.addf %12, %14 : vector<16x128xf32>
    %cst_10 = arith.constant 0.000000e+00 : f32
    %16 = vector.broadcast %cst_10 : f32 to vector<16x128xf32>
    %17 = arith.maximumf %15, %16 : vector<16x128xf32>
    %18 = arith.truncf %17 : vector<16x128xf32> to vector<16x128xbf16>
    %c0_11 = arith.constant 0 : index
    %c0_12 = arith.constant 0 : index
    %19 = vector.load %arg6[%c0_11, %c0_12] : memref<128x128xbf16, #tpu.memory_space<vmem>>, vector<128x128xbf16>
    %cst_13 = arith.constant dense<0.000000e+00> : vector<16x128xf32>
    %20 = tpu.matmul %18, %19, %cst_13 {dimension_numbers = #tpu.dot_dimension_numbers<[1], [0], [0], [1], [0, 0, 1, 1], [], []>} : vector<16x128xbf16>, vector<128x128xbf16>, vector<16x128xf32> -> vector<16x128xf32>
    %c0_14 = arith.constant 0 : index
    %c0_15 = arith.constant 0 : index
    %21 = vector.load %arg7[%c0_14, %c0_15] : memref<1x128xf32, #tpu.memory_space<vmem>>, vector<1x128xf32>
    %22 = vector.broadcast %21 : vector<1x128xf32> to vector<16x128xf32>
    %23 = arith.addf %20, %22 : vector<16x128xf32>
    %c0_16 = arith.constant 0 : index
    %c0_17 = arith.constant 0 : index
    %24 = vector.load %arg8[%c0_16, %c0_17] : memref<16x128xf32, #tpu.memory_space<vmem>>, vector<16x128xf32>
    tpu.vector_store %arg8[%c0_16, %c0_17], %23 {strides = array<i32>} : memref<16x128xf32, #tpu.memory_space<vmem>>, vector<16x128xf32>,
    return
  }
  func.func @transform_0(%arg0: i32) -> (i32, i32) {
    %c0_i32 = arith.constant 0 : i32
    %c0_i32_0 = arith.constant 0 : i32
    return %arg0, %c0_i32 : i32, i32
  }
  func.func @transform_1(%arg0: i32) -> (i32, i32) {
    %c0_i32 = arith.constant 0 : i32
    %c0_i32_0 = arith.constant 0 : i32
    return %arg0, %c0_i32 : i32, i32
  }
  func.func @transform_2(%arg0: i32) -> (i32, i32) {
    %c0_i32 = arith.constant 0 : i32
    %c0_i32_0 = arith.constant 0 : i32
    %c0_i32_1 = arith.constant 0 : i32
    return %c0_i32, %c0_i32_0 : i32, i32
  }
  func.func @transform_3(%arg0: i32) -> (i32, i32) {
    %c0_i32 = arith.constant 0 : i32
    %c0_i32_0 = arith.constant 0 : i32
    %c0_i32_1 = arith.constant 0 : i32
    return %c0_i32, %c0_i32_0 : i32, i32
  }
  func.func @transform_4(%arg0: i32) -> (i32, i32) {
    %c0_i32 = arith.constant 0 : i32
    %c0_i32_0 = arith.constant 0 : i32
    %c0_i32_1 = arith.constant 0 : i32
    return %c0_i32, %c0_i32_0 : i32, i32
  }
  func.func @transform_5(%arg0: i32) -> (i32, i32) {
    %c0_i32 = arith.constant 0 : i32
    %c0_i32_0 = arith.constant 0 : i32
    %c0_i32_1 = arith.constant 0 : i32
    return %c0_i32, %c0_i32_0 : i32, i32
  }
  func.func @transform_6(%arg0: i32) -> (i32, i32) {
    %c0_i32 = arith.constant 0 : i32
    %c0_i32_0 = arith.constant 0 : i32
    %c0_i32_1 = arith.constant 0 : i32
    return %c0_i32, %c0_i32_0 : i32, i32
  }
  func.func @transform_7(%arg0: i32) -> (i32, i32) {
    %c0_i32 = arith.constant 0 : i32
    %c0_i32_0 = arith.constant 0 : i32
    return %arg0, %c0_i32 : i32, i32
  }
}

module attributes {stable_mosaic.version = 11 : i64} {
  func.func @_fwd_dynamics_kernel(%arg0: i32, %arg1: memref<16x128xbf16, #tpu.memory_space<vmem>>, %arg2: memref<16x1xi32, #tpu.memory_space<vmem>>, %arg3: memref<128x128xbf16, #tpu.memory_space<vmem>>, %arg4: memref<8x128xbf16, #tpu.memory_space<vmem>>, %arg5: memref<1x128xf32, #tpu.memory_space<vmem>>, %arg6: memref<128x128xbf16, #tpu.memory_space<vmem>>, %arg7: memref<1x128xf32, #tpu.memory_space<vmem>>, %arg8: memref<16x128xf32, #tpu.memory_space<vmem>>) attributes {dimension_semantics = [#tpu.dimension_semantics<parallel>], iteration_bounds = array<i64: 2>, scalar_prefetch = 0 : i64, scratch_operands = 0 : i64, tpu.core_type = #tpu.core_type<tc>, window_params = [{transform_indices = @transform_0, window_bounds = array<i64: 16, 128>}, {transform_indices = @transform_1, window_bounds = array<i64: 16, 1>}, {pipeline_mode = #tpu.pipeline_mode<synchronous>, transform_indices = @transform_2, window_bounds = array<i64: 128, 128>}, {pipeline_mode = #tpu.pipeline_mode<synchronous>, transform_indices = @transform_3, window_bounds = array<i64: 8, 128>}, {pipeline_mode = #tpu.pipeline_mode<synchronous>, transform_indices = @transform_4, window_bounds = array<i64: 1, 128>}, {pipeline_mode = #tpu.pipeline_mode<synchronous>, transform_indices = @transform_5, window_bounds = array<i64: 128, 128>}, {pipeline_mode = #tpu.pipeline_mode<synchronous>, transform_indices = @transform_6, window_bounds = array<i64: 1, 128>}, {transform_indices = @transform_7, window_bounds = array<i64: 16, 128>}]} {
    %c0 = arith.constant 0 : index
    %c0_0 = arith.constant 0 : index
    %0 = vector.load %arg1[%c0, %c0_0] : memref<16x128xbf16, #tpu.memory_space<vmem>>, vector<16x128xbf16>
    %1 = tpu.iota {dimensions = array<i32: 1>} : vector<16x8xi32>
    %c0_1 = arith.constant 0 : index
    %c0_2 = arith.constant 0 : index
    %2 = vector.load %arg2[%c0_1, %c0_2] : memref<16x1xi32, #tpu.memory_space<vmem>>, vector<16x1xi32>
    %3 = vector.broadcast %2 : vector<16x1xi32> to vector<16x8xi32>
    %4 = arith.cmpi eq, %1, %3 : vector<16x8xi32>
    %5 = arith.extui %4 : vector<16x8xi1> to vector<16x8xi32>
    %6 = arith.sitofp %5 : vector<16x8xi32> to vector<16x8xf32>
    %7 = arith.truncf %6 : vector<16x8xf32> to vector<16x8xbf16>
    %c0_3 = arith.constant 0 : index
    %c0_4 = arith.constant 0 : index
    %8 = vector.load %arg3[%c0_3, %c0_4] : memref<128x128xbf16, #tpu.memory_space<vmem>>, vector<128x128xbf16>
    %cst = arith.constant dense<0.000000e+00> : vector<16x128xf32>
    %9 = tpu.matmul %0, %8, %cst {dimension_numbers = #tpu.dot_dimension_numbers<[1], [0], [0], [1], [0, 0, 1, 1], [], []>} : vector<16x128xbf16>, vector<128x128xbf16>, vector<16x128xf32> -> vector<16x128xf32>
    %c0_5 = arith.constant 0 : index
    %c0_6 = arith.constant 0 : index
    %10 = vector.load %arg4[%c0_5, %c0_6] : memref<8x128xbf16, #tpu.memory_space<vmem>>, vector<8x128xbf16>
    %cst_7 = arith.constant dense<0.000000e+00> : vector<16x128xf32>
    %11 = tpu.matmul %7, %10, %cst_7 {dimension_numbers = #tpu.dot_dimension_numbers<[1], [0], [0], [1], [0, 0, 1, 1], [], []>} : vector<16x8xbf16>, vector<8x128xbf16>, vector<16x128xf32> -> vector<16x128xf32>
    %12 = arith.addf %9, %11 : vector<16x128xf32>
    %c0_8 = arith.constant 0 : index
    %c0_9 = arith.constant 0 : index
    %13 = vector.load %arg5[%c0_8, %c0_9] : memref<1x128xf32, #tpu.memory_space<vmem>>, vector<1x128xf32>
    %14 = vector.broadcast %13 : vector<1x128xf32> to vector<16x128xf32>
    %15 = arith.addf %12, %14 : vector<16x128xf32>
    %cst_10 = arith.constant 0.000000e+00 : f32
    %16 = vector.broadcast %cst_10 : f32 to vector<16x128xf32>
    %17 = arith.maximumf %15, %16 : vector<16x128xf32>
    %18 = arith.truncf %17 : vector<16x128xf32> to vector<16x128xbf16>
    %c0_11 = arith.constant 0 : index
    %c0_12 = arith.constant 0 : index
    %19 = vector.load %arg6[%c0_11, %c0_12] : memref<128x128xbf16, #tpu.memory_space<vmem>>, vector<128x128xbf16>
    %cst_13 = arith.constant dense<0.000000e+00> : vector<16x128xf32>
    %20 = tpu.matmul %18, %19, %cst_13 {dimension_numbers = #tpu.dot_dimension_numbers<[1], [0], [0], [1], [0, 0, 1, 1], [], []>} : vector<16x128xbf16>, vector<128x128xbf16>, vector<16x128xf32> -> vector<16x128xf32>
    %c0_14 = arith.constant 0 : index
    %c0_15 = arith.constant 0 : index
    %21 = vector.load %arg7[%c0_14, %c0_15] : memref<1x128xf32, #tpu.memory_space<vmem>>, vector<1x128xf32>
    %22 = vector.broadcast %21 : vector<1x128xf32> to vector<16x128xf32>
    %23 = arith.addf %20, %22 : vector<16x128xf32>
    %c0_16 = arith.constant 0 : index
    %c0_17 = arith.constant 0 : index
    %24 = vector.load %arg8[%c0_16, %c0_17] : memref<16x128xf32, #tpu.memory_space<vmem>>, vector<16x128xf32>
    tpu.vector_store %arg8[%c0_16, %c0_17], %23 {strides = array<i32>} : memref<16x128xf32, #tpu.memory_space<vmem>>, vector<16x128xf32>,
    return
  }
  func.func @transform_0(%arg0: i32) -> (i32, i32) {
    %c0_i32 = arith.constant 0 : i32
    %c0_i32_0 = arith.constant 0 : i32
    return %arg0, %c0_i32 : i32, i32
  }
  func.func @transform_1(%arg0: i32) -> (i32, i32) {
    %c0_i32 = arith.constant 0 : i32
    %c0_i32_0 = arith.constant 0 : i32
    return %arg0, %c0_i32 : i32, i32
  }
  func.func @transform_2(%arg0: i32) -> (i32, i32) {
    %c0_i32 = arith.constant 0 : i32
    %c0_i32_0 = arith.constant 0 : i32
    %c0_i32_1 = arith.constant 0 : i32
    return %c0_i32, %c0_i32_0 : i32, i32
  }
  func.func @transform_3(%arg0: i32) -> (i32, i32) {
    %c0_i32 = arith.constant 0 : i32
    %c0_i32_0 = arith.constant 0 : i32
    %c0_i32_1 = arith.constant 0 : i32
    return %c0_i32, %c0_i32_0 : i32, i32
  }
  func.func @transform_4(%arg0: i32) -> (i32, i32) {
    %c0_i32 = arith.constant 0 : i32
    %c0_i32_0 = arith.constant 0 : i32
    %c0_i32_1 = arith.constant 0 : i32
    return %c0_i32, %c0_i32_0 : i32, i32
  }
  func.func @transform_5(%arg0: i32) -> (i32, i32) {
    %c0_i32 = arith.constant 0 : i32
    %c0_i32_0 = arith.constant 0 : i32
    %c0_i32_1 = arith.constant 0 : i32
    return %c0_i32, %c0_i32_0 : i32, i32
  }
  func.func @transform_6(%arg0: i32) -> (i32, i32) {
    %c0_i32 = arith.constant 0 : i32
    %c0_i32_0 = arith.constant 0 : i32
    %c0_i32_1 = arith.constant 0 : i32
    return %c0_i32, %c0_i32_0 : i32, i32
  }
  func.func @transform_7(%arg0: i32) -> (i32, i32) {
    %c0_i32 = arith.constant 0 : i32
    %c0_i32_0 = arith.constant 0 : i32
    return %arg0, %c0_i32 : i32, i32
  }
}

</mosaic_0001>

<bundles_post_ra>
// kernel: tpu_custom_call.1
= control target key start
LH: loop header
LB: loop body
LE: loop exit
PB: predicated region body
PF: predicated region fallthrough
CT: control target
= control target key end

     0   :  { %12 = vsyncpa [#allocation3], 0  ;;  %s1145_s0 = inlined_call_operand.vmem [shape: bf16[32,128], index: 0, kind: input, shape index: {}]   ;;  %s1146_s1 = inlined_call_operand.vmem [shape: s32[32,1], index: 1, kind: input, shape index: {}]   ;;  %s1147_s2 = inlined_call_operand.hbm [shape: bf16[128,128], index: 2, kind: input, shape index: {}]   ;;  %s1148_s3 = inlined_call_operand.vmem [shape: bf16[8,128], index: 3, kind: input, shape index: {}]   ;;  %s1149_s4 = inlined_call_operand.vmem [shape: f32[1,128], index: 4, kind: input, shape index: {}]   ;;  %s1150_s5 = inlined_call_operand.hbm [shape: bf16[128,128], index: 5, kind: input, shape index: {}]   ;;  %s1151_s6 = inlined_call_operand.vmem [shape: f32[1,128], index: 6, kind: input, shape index: {}]   ;;  %s1152_s7 = inlined_call_operand.hbm [shape: f32[32,128], index: 7, kind: output, shape index: {}]  }
   0x1   :  { %13 = vsyncpa [#allocation6], 0 }
   0x2   :  { %14 = vsyncpa [#allocation4], 0 }
   0x3   :  { %16 = vsyncpa [#allocation4 + $0x1], 0  ;;  %s1024_s24 = smov 0   ;;  %s1026_s25 = smov 0  }
   0x4   :  { %s1028_s26 = smov 0   ;;  %s1030_s27 = smov 0  }
   0x5 LB: > { %s1045_s28 = sadd.s32 4294967295, %s974_s27   ;;  %s668_s29 = sadd.s32 4294967294, %s974_s27   ;;  %s974_s27 = sphi %s1030_s27, %s1159_s27   ;;  %s970_s26 = sphi %s1028_s26, %s1158_s26   ;;  %s966_s25 = sphi %s1026_s25, %s1157_s25   ;;  %s962_s24 = sphi %s1024_s24, %s1156_s24  }
   0x6   : > { %s1049_s30 = sadd.s32 1, %s974_s27   ;;  %s186_s8 = sadd.s32 1, %s970_s26 }
   0x7   : > { %s183_s9 = ssub.s32 %s974_s27, %s1049_s30  ;;  %p196_p0 = scmp.ne.s32.totalorder %s970_s26, %s966_s25 }
   0x8   : > { %p184_p1 = scmp.eq.s32.totalorder %s183_s9, 0  ;;  %p197_p2 = scmp.eq.s32.totalorder %s1045_s28, 1 }
   0x9   : > { %p202_p3 = scmp.ne.s32.totalorder %s966_s25, %s962_s24  ;;  %p203_p4 = scmp.eq.s32.totalorder %s668_s29, 1 }
   0xa   : > { %s1060_s10 = scalar_select %p184_p1, %s970_s26, %s186_s8  }
   0xb   : > { %p1062_p5 = por %p197_p2, %p196_p0  ;;  %p1066_p6 = por %p203_p4, %p202_p3 }
   0xc   : > { %p669_p7 = scmp.ge.s32.totalorder %s974_s27, 1  ;;  %p210_p8 = scmp.lt.s32.totalorder %s974_s27, 3 }
   0xd   : > { %p796_p9 = scmp.eq.s32.totalorder %s1045_s28, 0  ;;  %s221_s16 = sshll.u32 %s1147_s2, 4  ;;  %s222_s16 = int_to_ptr.hbm [resolvable:$true] %s221_s16 }
   0xe   : > { %p1073_p10 = pnand %p669_p7, %p210_p8  ;;  %s976_s17 = smov [#allocation2]  }
   0xf   : > { %s223_s18 = sshll.u32 %s976_s17, 4  ;;  %s241_s21 = sshll.u32 %s1150_s5, 4  ;;  %s224_s18 = int_to_ptr.vmem [resolvable:$true] %s223_s18  ;;  %s242_s21 = int_to_ptr.hbm [resolvable:$true] %s241_s21 }
  0x10   : > { %p785_p11 = pneg %p1073_p10  ;;  %s977_s22 = smov 64  }
  0x11   : > { %s978_s23 = smov 4   ;;  %s979_s29 = smov [#allocation5]  }
  0x12   : > { %p786_p12 = pnand %p796_p9, %p785_p11  ;;  %s243_s8 = sshll.u32 %s979_s29, 4  ;;  %s244_s8 = int_to_ptr.vmem [resolvable:$true] %s243_s8 }
  0x13   : > { %280 = sbr.rel (%p1073_p10) target bundleno = 449 (0x1c1), region = 48 }
  0x14   : > { %788 = dma.hbm_to_vmem [thread:$0]  (!%p786_p12), %s222_s16, 1024, %s224_s18, [#allocation3], %s977_s22, %s977_s22, %s978_s23  }
  0x15   : > { %791 = dma.hbm_to_vmem [thread:$0]  (!%p786_p12), %s242_s21, 1024, %s244_s8, [#allocation6], %s977_s22, %s977_s22, %s978_s23  }
  0x18   : > { %949 = dma.done.wait (%p796_p9), [#allocation3], 1024  }
  0x19   : > { %951 = vsyncadd (%p796_p9), [#allocation3], 4294966272 }
  0x1a   : > { %953 = dma.done.wait (%p796_p9), [#allocation6], 1024  }
  0x1b   : > { %955 = vsyncadd (%p796_p9), [#allocation6], 4294966272  ;;  %s677_s9 = sshll.u32 %s1045_s28, 1  ;;  %v980_v0 = vmov 0   ;;  %v765_v2 = vld [vmem:[#allocation2 + $0x38] sm:$0xff]  ;;  %v764_v3 = vld [vmem:[#allocation2 + $0x30] sm:$0xff]  ;;  %v339_v16 = vlaneseq }
  0x1c   : > { %841 = vset.pattern.permute.xlu0 %v980_v0  ;;  %p324_p13 = scmp.lt.s32.totalorder %s677_s9, 3  ;;  %449 = vmatpush.bf16.msra.mxu1 %v765_v2  ;;  %v763_v5 = vld [vmem:[#allocation2 + $0x28] sm:$0xff]  ;;  %v762_v6 = vld [vmem:[#allocation2 + $0x20] sm:$0xff]  ;;  %v761_v7 = vld [vmem:[#allocation2 + $0x18] sm:$0xff]  ;;  %vm377_vm0 = vcmask 1043456   ;;  %v981_v20 = vmov 0.0  }
  0x1d   : > { %v760_v8 = vld [vmem:[#allocation2 + $0x10] sm:$0xff]  ;;  %v759_v9 = vld [vmem:[#allocation2 + $0x8] sm:$0xff]  ;;  %v758_v10 = vld [vmem:[#allocation2] sm:$0xff]  ;;  %v340_v18 = vand.u32 127, %v339_v16  ;;  %vm373_vm3 = vcmask 64512   ;;  %s320_s8 = sand.u32 1, %s966_s25  }
  0x1e   : > { %s1161_s9 = smov (!%p324_p13, %s677_s9), 3  ;;  %v372_v12 = vld [vmem:[%s1148_s3] sm:$0xf]  ;;  %v773_v14 = vld [vmem:[#allocation5 + $0x38] sm:$0xff]  ;;  %v772_v15 = vld [vmem:[#allocation5 + $0x30] sm:$0xff]  ;;  %s774_s15 = sshll.u32 %s1045_s28, 4 }
  0x1f   : > { %s680_s13 = sshll.u32 %s1161_s9, 3  ;;  %s678_s17 = sshll.u32 %s1161_s9, 2  ;;  %v379_v13 = vsel %vm377_vm0, %v372_v12, 0  ;;  %540 = vmatpush.bf16.msra.mxu2 %v773_v14  ;;  %v771_v24 = vld [vmem:[#allocation5 + $0x28] sm:$0xff]  ;;  %v770_v25 = vld [vmem:[#allocation5 + $0x20] sm:$0xff]  ;;  %v769_v26 = vld [vmem:[#allocation5 + $0x18] sm:$0xff] }
  0x20   : > { %s333_s16 = scalar_lea.vmem %s1146_s1, %s680_s13  ;;  %450 = vmatpush.bf16.msra.mxu1 %v764_v3  ;;  %s327_s20 = scalar_lea.vmem %s1145_s0, %s678_s17  ;;  %388 = vmatpush.bf16.msra.mxu0 %v379_v13  ;;  %v768_v27 = vld [vmem:[#allocation5 + $0x10] sm:$0xff]  ;;  %v767_v28 = vld [vmem:[#allocation5 + $0x8] sm:$0xff]  ;;  %v766_v29 = vld [vmem:[#allocation5] sm:$0xff] }
  0x21   : > { %v341_v1 = vld [vmem:[%s333_s16] sm:$0xff]  ;;  %v342_v4 = vld [vmem:[%s333_s16 + $0x8] sm:$0xff]  ;;  %s676_s9 = sshll.u32 %s320_s8, 4  ;;  %s568_s18 = scalar_lea.hbm %s1152_s7, %s774_s15 }
  0x22   : > { %344 = vperm.xlu0 %841, %v341_v1   ;;  %v757_v11 = vld [vmem:[%s327_s20] sm:$0xff]  ;;  %s322_s19 = scalar_lea.vmem [#allocation7], %s676_s9  ;;  %s571_s21 = sshll.u32 %s568_s18, 4  ;;  %s572_s21 = int_to_ptr.hbm [resolvable:$true] %s571_s21 }
  0x23   : > { %541 = vmatpush.bf16.msra.mxu2 %v772_v15  ;;  %v842_v33 = vld [vmem:[%s1149_s4] ss:$0 sm:$0xff]  ;;  %s569_s20 = sshll.u32 %s322_s19, 4  ;;  %s557_s22 = scalar_lea.sflag [#allocation4], %s320_s8  ;;  %s570_s20 = int_to_ptr.vmem [resolvable:$true] %s569_s20 }
  0x24   : > { %451 = vmatpush.bf16.msra.mxu1 %v763_v5  ;;  %v843_v42 = vld [vmem:[%s1151_s6] ss:$0 sm:$0xff]  ;;  %s918_s23 = sshra.s32 %s572_s21, 4  ;;  %s924_s9 = scalar_lea.hbm %s1152_s7, 32  ;;  %s919_s23 = int_to_ptr.hbm [resolvable:$true] %s918_s23 }
  0x25   : > { %s920_s28 = scalar_lea.hbm %s919_s23, 16  ;;  %p925_p3 = scmp.lt.s32.totalorder %s919_s23, %s1152_s7 }
  0x26   : > { %p921_p0 = scmp.ne.s32.totalorder %s919_s23, %s920_s28  ;;  %p926_p4 = scmp.lt.s32.totalorder %s924_s9, %s920_s28 }
  0x27   : > { %542 = vmatpush.bf16.msra.mxu2 %v771_v24 }
  0x28   : > { %452 = vmatpush.bf16.msra.mxu1 %v762_v6  ;;  %p922_p1 = pnand %p921_p0, %p1062_p5  ;;  %p927_p7 = por %p926_p4, %p925_p3 }
  0x2a   : > { %347 = vperm.xlu0 %841, %v342_v4   ;;  %p923_p2 = pneg %p922_p1 }
  0x2b   : > { %543 = vmatpush.bf16.msra.mxu2 %v770_v25 }
  0x2c   : > { %453 = vmatpush.bf16.msra.mxu1 %v761_v7  ;;  %p928_p8 = pnand %p927_p7, %p923_p2 }
  0x2f   : > { %544 = vmatpush.bf16.msra.mxu2 %v769_v26 }
  0x30   : > { %454 = vmatpush.bf16.msra.mxu1 %v760_v8 }
  0x33   : > { %545 = vmatpush.bf16.msra.mxu2 %v768_v27 }
  0x34   : > { %455 = vmatpush.bf16.msra.mxu1 %v759_v9 }
  0x37   : > { %546 = vmatpush.bf16.msra.mxu2 %v767_v28 }
  0x38   : > { %456 = vmatpush.bf16.msra.mxu1 %v758_v10 }
  0x3b   : > { %457 = vmatmul.bf16.vlgmr.msra.gmra.mxu1 %v757_v11  ;;  %547 = vmatpush.bf16.msra.mxu2 %v766_v29 }
  0x94   : > { %v345_v17 = vpop.permute.xlu0 %344 }
  0x95   : > { %vm349_vm1 = vcmp.eq.s32.totalorder %v340_v18, %v345_v17 }
  0x96   : > { %v681_v21 = vsel %vm349_vm1, 1.0, %v981_v20 }
  0x9c   : > { %v348_v19 = vpop.permute.xlu0 %347 }
  0x9d   : > { %vm350_vm2 = vcmp.eq.s32.totalorder %v340_v18, %v348_v19 }
  0x9e   : > { %v682_v22 = vsel %vm350_vm2, 1.0, %v981_v20 }
  0x9f   : > { %v355_v23 = vpack.c.bf16 %v682_v22, %v681_v21 }
  0xa1   : > { %683 = vmatmul.msk.bf16.vlgmr.msra.gmra.mxu0 %vm373_vm3, %v355_v23 }
  0xb8   : > { %v458_v30 = vpop.f32.mrf.mxu1 }
  0xc0   : > { %v460_v34 = vpop.f32.mrf.mxu1 }
 0x11e   : > { %v390_v31 = vpop.f32.mrf.mxu0 }
 0x11f   : > { %v459_v32 = vadd.f32 %v458_v30, %v390_v31 }
 0x121   : > { %v467_v36 = vadd.f32 %v842_v33, %v459_v32 }
 0x123   : > { %v469_v39 = vmax.f32 %v467_v36, 0.0 }
 0x126   : > { %v392_v35 = vpop.f32.mrf.mxu0 }
 0x127   : > { %v461_v37 = vadd.f32 %v460_v34, %v392_v35 }
 0x129   : > { %v468_v38 = vadd.f32 %v842_v33, %v461_v37 }
 0x12b   : > { %v470_v40 = vmax.f32 %v468_v38, 0.0 }
 0x12d   : > { %v471_v41 = vpack.c.bf16 %v470_v40, %v469_v39 }
 0x12f   : > { %548 = vmatmul.bf16.vlgmr.msra.gmra.mxu2 %v471_v41 }
 0x1b2   : > { %v549_v43 = vpop.f32.mrf.mxu2 }
 0x1b3   : > { %v550_v44 = vadd.f32 %v843_v42, %v549_v43 }
 0x1b5   : > { %554 = vst [vmem:[%s322_s19] sm:$0xff] %v550_v44 }
 0x1ba   : > { %v551_v45 = vpop.f32.mrf.mxu2 }
 0x1bb   : > { %v552_v46 = vadd.f32 %v843_v42, %v551_v45 }
 0x1bd   : > { %555 = vst [vmem:[%s322_s19 + $0x8] sm:$0xff] %v552_v46 }
 0x1be   : > { %931 = shalt.err (!%p928_p8)
}
 0x1bf   : > { %s982_s8 = smov 128   ;;  %s983_s16 = smov 8  }
 0x1c0   : > { %783 = dma.vmem_to_hbm [thread:$0]  (%p1062_p5), %s570_s20, 256, %s572_s21, %s557_s22, %s982_s8, %s982_s8, %s983_s16  }
 0x1c1 PF: > { %p800_p9 = scmp.ge.s32.totalorder %s974_s27, 2  ;;  %s586_s17 = sand.u32 1, %s962_s24  }
 0x1c2   : > { %s587_s18 = scalar_lea.sflag [#allocation4], %s586_s17 }
 0x1c3   : > { %p793_p10 = pnand %p800_p9, %p1066_p6 }
 0x1c5   : > { %p794_p11 = pneg %p793_p10 }
 0x1c7   : > { %957 = dma.done.wait (%p794_p11), %s587_s18, 256  }
 0x1c8   : > { %959 = vsyncadd (%p794_p11), %s587_s18, 4294967040  ;;  %p19_p12 = scmp.ge.s32.totalorder %s1049_s30, 4   ;;  %s1156_s24 = smov %s966_s25 }
 0x1c9   : > { %s1157_s25 = smov %s970_s26  ;;  %s1158_s26 = smov %s1060_s10 }
 0x1ca   : > { %s1159_s27 = smov %s1049_s30  ;;  %21 = sbr.rel (!%p19_p12) target bundleno = 5 (0x5), region = 95 }
 0x1cf   :  { %593 = vsyncpa [#allocation3], 1 }
 0x1d0   :  { %595 = vsyncpa [#allocation3 + $0x1], 1 }
 0x1d1   :  { %596 = vsyncpa [#allocation6], 1 }
 0x1d2   :  { %597 = vsyncpa [#allocation4], 1 }
 0x1d3   :  { %599 = vsyncpa [#allocation4 + $0x1], 1 }

// kernel: tpu_custom_call.1
= control target key start
LH: loop header
LB: loop body
LE: loop exit
PB: predicated region body
PF: predicated region fallthrough
CT: control target
= control target key end

     0   :  { %12 = vsyncpa [#allocation3], 0  ;;  %s1145_s0 = inlined_call_operand.vmem [shape: bf16[32,128], index: 0, kind: input, shape index: {}]   ;;  %s1146_s1 = inlined_call_operand.vmem [shape: s32[32,1], index: 1, kind: input, shape index: {}]   ;;  %s1147_s2 = inlined_call_operand.hbm [shape: bf16[128,128], index: 2, kind: input, shape index: {}]   ;;  %s1148_s3 = inlined_call_operand.vmem [shape: bf16[8,128], index: 3, kind: input, shape index: {}]   ;;  %s1149_s4 = inlined_call_operand.vmem [shape: f32[1,128], index: 4, kind: input, shape index: {}]   ;;  %s1150_s5 = inlined_call_operand.hbm [shape: bf16[128,128], index: 5, kind: input, shape index: {}]   ;;  %s1151_s6 = inlined_call_operand.vmem [shape: f32[1,128], index: 6, kind: input, shape index: {}]   ;;  %s1152_s7 = inlined_call_operand.hbm [shape: f32[32,128], index: 7, kind: output, shape index: {}]  }
   0x1   :  { %13 = vsyncpa [#allocation6], 0 }
   0x2   :  { %14 = vsyncpa [#allocation4], 0 }
   0x3   :  { %16 = vsyncpa [#allocation4 + $0x1], 0  ;;  %s1024_s24 = smov 0   ;;  %s1026_s25 = smov 0  }
   0x4   :  { %s1028_s26 = smov 0   ;;  %s1030_s27 = smov 0  }
   0x5 LB: > { %s1045_s28 = sadd.s32 4294967295, %s974_s27   ;;  %s668_s29 = sadd.s32 4294967294, %s974_s27   ;;  %s974_s27 = sphi %s1030_s27, %s1159_s27   ;;  %s970_s26 = sphi %s1028_s26, %s1158_s26   ;;  %s966_s25 = sphi %s1026_s25, %s1157_s25   ;;  %s962_s24 = sphi %s1024_s24, %s1156_s24  }
   0x6   : > { %s1049_s30 = sadd.s32 1, %s974_s27   ;;  %s186_s8 = sadd.s32 1, %s970_s26 }
   0x7   : > { %s183_s9 = ssub.s32 %s974_s27, %s1049_s30  ;;  %p196_p0 = scmp.ne.s32.totalorder %s970_s26, %s966_s25 }
   0x8   : > { %p184_p1 = scmp.eq.s32.totalorder %s183_s9, 0  ;;  %p197_p2 = scmp.eq.s32.totalorder %s1045_s28, 1 }
   0x9   : > { %p202_p3 = scmp.ne.s32.totalorder %s966_s25, %s962_s24  ;;  %p203_p4 = scmp.eq.s32.totalorder %s668_s29, 1 }
   0xa   : > { %s1060_s10 = scalar_select %p184_p1, %s970_s26, %s186_s8  }
   0xb   : > { %p1062_p5 = por %p197_p2, %p196_p0  ;;  %p1066_p6 = por %p203_p4, %p202_p3 }
   0xc   : > { %p669_p7 = scmp.ge.s32.totalorder %s974_s27, 1  ;;  %p210_p8 = scmp.lt.s32.totalorder %s974_s27, 3 }
   0xd   : > { %p796_p9 = scmp.eq.s32.totalorder %s1045_s28, 0  ;;  %s221_s16 = sshll.u32 %s1147_s2, 4  ;;  %s222_s16 = int_to_ptr.hbm [resolvable:$true] %s221_s16 }
   0xe   : > { %p1073_p10 = pnand %p669_p7, %p210_p8  ;;  %s976_s17 = smov [#allocation2]  }
   0xf   : > { %s223_s18 = sshll.u32 %s976_s17, 4  ;;  %s241_s21 = sshll.u32 %s1150_s5, 4  ;;  %s224_s18 = int_to_ptr.vmem [resolvable:$true] %s223_s18  ;;  %s242_s21 = int_to_ptr.hbm [resolvable:$true] %s241_s21 }
  0x10   : > { %p785_p11 = pneg %p1073_p10  ;;  %s977_s22 = smov 64  }
  0x11   : > { %s978_s23 = smov 4   ;;  %s979_s29 = smov [#allocation5]  }
  0x12   : > { %p786_p12 = pnand %p796_p9, %p785_p11  ;;  %s243_s8 = sshll.u32 %s979_s29, 4  ;;  %s244_s8 = int_to_ptr.vmem [resolvable:$true] %s243_s8 }
  0x13   : > { %280 = sbr.rel (%p1073_p10) target bundleno = 449 (0x1c1), region = 48 }
  0x14   : > { %788 = dma.hbm_to_vmem [thread:$0]  (!%p786_p12), %s222_s16, 1024, %s224_s18, [#allocation3], %s977_s22, %s977_s22, %s978_s23  }
  0x15   : > { %791 = dma.hbm_to_vmem [thread:$0]  (!%p786_p12), %s242_s21, 1024, %s244_s8, [#allocation6], %s977_s22, %s977_s22, %s978_s23  }
  0x18   : > { %949 = dma.done.wait (%p796_p9), [#allocation3], 1024  }
  0x19   : > { %951 = vsyncadd (%p796_p9), [#allocation3], 4294966272 }
  0x1a   : > { %953 = dma.done.wait (%p796_p9), [#allocation6], 1024  }
  0x1b   : > { %955 = vsyncadd (%p796_p9), [#allocation6], 4294966272  ;;  %s677_s9 = sshll.u32 %s1045_s28, 1  ;;  %v980_v0 = vmov 0   ;;  %v765_v2 = vld [vmem:[#allocation2 + $0x38] sm:$0xff]  ;;  %v764_v3 = vld [vmem:[#allocation2 + $0x30] sm:$0xff]  ;;  %v339_v16 = vlaneseq }
  0x1c   : > { %841 = vset.pattern.permute.xlu0 %v980_v0  ;;  %p324_p13 = scmp.lt.s32.totalorder %s677_s9, 3  ;;  %449 = vmatpush.bf16.msra.mxu1 %v765_v2  ;;  %v763_v5 = vld [vmem:[#allocation2 + $0x28] sm:$0xff]  ;;  %v762_v6 = vld [vmem:[#allocation2 + $0x20] sm:$0xff]  ;;  %v761_v7 = vld [vmem:[#allocation2 + $0x18] sm:$0xff]  ;;  %vm377_vm0 = vcmask 1043456   ;;  %v981_v20 = vmov 0.0  }
  0x1d   : > { %v760_v8 = vld [vmem:[#allocation2 + $0x10] sm:$0xff]  ;;  %v759_v9 = vld [vmem:[#allocation2 + $0x8] sm:$0xff]  ;;  %v758_v10 = vld [vmem:[#allocation2] sm:$0xff]  ;;  %v340_v18 = vand.u32 127, %v339_v16  ;;  %vm373_vm3 = vcmask 64512   ;;  %s320_s8 = sand.u32 1, %s966_s25  }
  0x1e   : > { %s1161_s9 = smov (!%p324_p13, %s677_s9), 3  ;;  %v372_v12 = vld [vmem:[%s1148_s3] sm:$0xf]  ;;  %v773_v14 = vld [vmem:[#allocation5 + $0x38] sm:$0xff]  ;;  %v772_v15 = vld [vmem:[#allocation5 + $0x30] sm:$0xff]  ;;  %s774_s15 = sshll.u32 %s1045_s28, 4 }
  0x1f   : > { %s680_s13 = sshll.u32 %s1161_s9, 3  ;;  %s678_s17 = sshll.u32 %s1161_s9, 2  ;;  %v379_v13 = vsel %vm377_vm0, %v372_v12, 0  ;;  %540 = vmatpush.bf16.msra.mxu2 %v773_v14  ;;  %v771_v24 = vld [vmem:[#allocation5 + $0x28] sm:$0xff]  ;;  %v770_v25 = vld [vmem:[#allocation5 + $0x20] sm:$0xff]  ;;  %v769_v26 = vld [vmem:[#allocation5 + $0x18] sm:$0xff] }
  0x20   : > { %s333_s16 = scalar_lea.vmem %s1146_s1, %s680_s13  ;;  %450 = vmatpush.bf16.msra.mxu1 %v764_v3  ;;  %s327_s20 = scalar_lea.vmem %s1145_s0, %s678_s17  ;;  %388 = vmatpush.bf16.msra.mxu0 %v379_v13  ;;  %v768_v27 = vld [vmem:[#allocation5 + $0x10] sm:$0xff]  ;;  %v767_v28 = vld [vmem:[#allocation5 + $0x8] sm:$0xff]  ;;  %v766_v29 = vld [vmem:[#allocation5] sm:$0xff] }
  0x21   : > { %v341_v1 = vld [vmem:[%s333_s16] sm:$0xff]  ;;  %v342_v4 = vld [vmem:[%s333_s16 + $0x8] sm:$0xff]  ;;  %s676_s9 = sshll.u32 %s320_s8, 4  ;;  %s568_s18 = scalar_lea.hbm %s1152_s7, %s774_s15 }
  0x22   : > { %344 = vperm.xlu0 %841, %v341_v1   ;;  %v757_v11 = vld [vmem:[%s327_s20] sm:$0xff]  ;;  %s322_s19 = scalar_lea.vmem [#allocation7], %s676_s9  ;;  %s571_s21 = sshll.u32 %s568_s18, 4  ;;  %s572_s21 = int_to_ptr.hbm [resolvable:$true] %s571_s21 }
  0x23   : > { %541 = vmatpush.bf16.msra.mxu2 %v772_v15  ;;  %v842_v33 = vld [vmem:[%s1149_s4] ss:$0 sm:$0xff]  ;;  %s569_s20 = sshll.u32 %s322_s19, 4  ;;  %s557_s22 = scalar_lea.sflag [#allocation4], %s320_s8  ;;  %s570_s20 = int_to_ptr.vmem [resolvable:$true] %s569_s20 }
  0x24   : > { %451 = vmatpush.bf16.msra.mxu1 %v763_v5  ;;  %v843_v42 = vld [vmem:[%s1151_s6] ss:$0 sm:$0xff]  ;;  %s918_s23 = sshra.s32 %s572_s21, 4  ;;  %s924_s9 = scalar_lea.hbm %s1152_s7, 32  ;;  %s919_s23 = int_to_ptr.hbm [resolvable:$true] %s918_s23 }
  0x25   : > { %s920_s28 = scalar_lea.hbm %s919_s23, 16  ;;  %p925_p3 = scmp.lt.s32.totalorder %s919_s23, %s1152_s7 }
  0x26   : > { %p921_p0 = scmp.ne.s32.totalorder %s919_s23, %s920_s28  ;;  %p926_p4 = scmp.lt.s32.totalorder %s924_s9, %s920_s28 }
  0x27   : > { %542 = vmatpush.bf16.msra.mxu2 %v771_v24 }
  0x28   : > { %452 = vmatpush.bf16.msra.mxu1 %v762_v6  ;;  %p922_p1 = pnand %p921_p0, %p1062_p5  ;;  %p927_p7 = por %p926_p4, %p925_p3 }
  0x2a   : > { %347 = vperm.xlu0 %841, %v342_v4   ;;  %p923_p2 = pneg %p922_p1 }
  0x2b   : > { %543 = vmatpush.bf16.msra.mxu2 %v770_v25 }
  0x2c   : > { %453 = vmatpush.bf16.msra.mxu1 %v761_v7  ;;  %p928_p8 = pnand %p927_p7, %p923_p2 }
  0x2f   : > { %544 = vmatpush.bf16.msra.mxu2 %v769_v26 }
  0x30   : > { %454 = vmatpush.bf16.msra.mxu1 %v760_v8 }
  0x33   : > { %545 = vmatpush.bf16.msra.mxu2 %v768_v27 }
  0x34   : > { %455 = vmatpush.bf16.msra.mxu1 %v759_v9 }
  0x37   : > { %546 = vmatpush.bf16.msra.mxu2 %v767_v28 }
  0x38   : > { %456 = vmatpush.bf16.msra.mxu1 %v758_v10 }
  0x3b   : > { %457 = vmatmul.bf16.vlgmr.msra.gmra.mxu1 %v757_v11  ;;  %547 = vmatpush.bf16.msra.mxu2 %v766_v29 }
  0x94   : > { %v345_v17 = vpop.permute.xlu0 %344 }
  0x95   : > { %vm349_vm1 = vcmp.eq.s32.totalorder %v340_v18, %v345_v17 }
  0x96   : > { %v681_v21 = vsel %vm349_vm1, 1.0, %v981_v20 }
  0x9c   : > { %v348_v19 = vpop.permute.xlu0 %347 }
  0x9d   : > { %vm350_vm2 = vcmp.eq.s32.totalorder %v340_v18, %v348_v19 }
  0x9e   : > { %v682_v22 = vsel %vm350_vm2, 1.0, %v981_v20 }
  0x9f   : > { %v355_v23 = vpack.c.bf16 %v682_v22, %v681_v21 }
  0xa1   : > { %683 = vmatmul.msk.bf16.vlgmr.msra.gmra.mxu0 %vm373_vm3, %v355_v23 }
  0xb8   : > { %v458_v30 = vpop.f32.mrf.mxu1 }
  0xc0   : > { %v460_v34 = vpop.f32.mrf.mxu1 }
 0x11e   : > { %v390_v31 = vpop.f32.mrf.mxu0 }
 0x11f   : > { %v459_v32 = vadd.f32 %v458_v30, %v390_v31 }
 0x121   : > { %v467_v36 = vadd.f32 %v842_v33, %v459_v32 }
 0x123   : > { %v469_v39 = vmax.f32 %v467_v36, 0.0 }
 0x126   : > { %v392_v35 = vpop.f32.mrf.mxu0 }
 0x127   : > { %v461_v37 = vadd.f32 %v460_v34, %v392_v35 }
 0x129   : > { %v468_v38 = vadd.f32 %v842_v33, %v461_v37 }
 0x12b   : > { %v470_v40 = vmax.f32 %v468_v38, 0.0 }
 0x12d   : > { %v471_v41 = vpack.c.bf16 %v470_v40, %v469_v39 }
 0x12f   : > { %548 = vmatmul.bf16.vlgmr.msra.gmra.mxu2 %v471_v41 }
 0x1b2   : > { %v549_v43 = vpop.f32.mrf.mxu2 }
 0x1b3   : > { %v550_v44 = vadd.f32 %v843_v42, %v549_v43 }
 0x1b5   : > { %554 = vst [vmem:[%s322_s19] sm:$0xff] %v550_v44 }
 0x1ba   : > { %v551_v45 = vpop.f32.mrf.mxu2 }
 0x1bb   : > { %v552_v46 = vadd.f32 %v843_v42, %v551_v45 }
 0x1bd   : > { %555 = vst [vmem:[%s322_s19 + $0x8] sm:$0xff] %v552_v46 }
 0x1be   : > { %931 = shalt.err (!%p928_p8)
}
 0x1bf   : > { %s982_s8 = smov 128   ;;  %s983_s16 = smov 8  }
 0x1c0   : > { %783 = dma.vmem_to_hbm [thread:$0]  (%p1062_p5), %s570_s20, 256, %s572_s21, %s557_s22, %s982_s8, %s982_s8, %s983_s16  }
 0x1c1 PF: > { %p800_p9 = scmp.ge.s32.totalorder %s974_s27, 2  ;;  %s586_s17 = sand.u32 1, %s962_s24  }
 0x1c2   : > { %s587_s18 = scalar_lea.sflag [#allocation4], %s586_s17 }
 0x1c3   : > { %p793_p10 = pnand %p800_p9, %p1066_p6 }
 0x1c5   : > { %p794_p11 = pneg %p793_p10 }
 0x1c7   : > { %957 = dma.done.wait (%p794_p11), %s587_s18, 256  }
 0x1c8   : > { %959 = vsyncadd (%p794_p11), %s587_s18, 4294967040  ;;  %p19_p12 = scmp.ge.s32.totalorder %s1049_s30, 4   ;;  %s1156_s24 = smov %s966_s25 }
 0x1c9   : > { %s1157_s25 = smov %s970_s26  ;;  %s1158_s26 = smov %s1060_s10 }
 0x1ca   : > { %s1159_s27 = smov %s1049_s30  ;;  %21 = sbr.rel (!%p19_p12) target bundleno = 5 (0x5), region = 95 }
 0x1cf   :  { %593 = vsyncpa [#allocation3], 1 }
 0x1d0   :  { %595 = vsyncpa [#allocation3 + $0x1], 1 }
 0x1d1   :  { %596 = vsyncpa [#allocation6], 1 }
 0x1d2   :  { %597 = vsyncpa [#allocation4], 1 }
 0x1d3   :  { %599 = vsyncpa [#allocation4 + $0x1], 1 }

</bundles_post_ra>
